<compile_context>
chip_gen: v7x
topology: tpu7x:2x2x1
jax: 0.10.0
libtpu: 0.0.40
codegen_flags: <defaults>
</compile_context>

<pallas_src>
import functools

import jax
import jax.numpy as jnp
from jax import lax
from jax.experimental import pallas as pl
from jax.experimental.pallas import tpu as pltpu


def _has_bf16_vpu():
    """True on TPU generations with native bf16 VALU/EUP (v6e and later)."""
    try:
        kind = jax.devices()[0].device_kind.lower()
    except Exception:
        return False
    return not any(v in kind for v in ("v2", "v3", "v4", "v5"))


def _fold_rows(v):
    """(R, 128) -> (1, 128). Halve with vreg-aligned VPU adds while R > 8,
    then one cheap in-vreg reduce for the last <= 8 rows."""
    r = v.shape[0]
    while r > 8 and r % 2 == 0:
        r //= 2
        v = v[:r] + v[r:]
    return jnp.sum(v, axis=0, keepdims=True)


def _ce_kernel(x_ref, lab_ref, loss_ref, cnt_ref, *, n, s_total, ignore_index,
               bf16_compute, need_b_mask, need_s_mask):
    # x_ref    : (BT, C, TS, 128) logits block, native dtype.
    # lab_ref  : (BT, 1, TS, 128) int32 labels block.
    # loss_ref : (1, 1, 1, 128) f32 partial loss sum (lane-wide).
    # cnt_ref  : (1, 1, 1, 128) f32 partial valid-position count.
    b0 = pl.program_id(0)
    s0 = pl.program_id(1)

    x = x_ref[...]
    if not bf16_compute:
        x = x.astype(jnp.float32)
    labels = lab_ref[...][:, 0]                      # (BT, TS, 128) int32
    bt, c, ts, _ = x.shape

    # Log-softmax over the class axis (a leading axis -> cross-vreg VPU ops).
    m = jnp.max(x, axis=1, keepdims=True)            # (BT, 1, TS, 128)
    shifted = x - m                                  # (BT, C, TS, 128)
    sumexp = jnp.sum(jnp.exp(shifted), axis=1, dtype=jnp.float32)  # f32 accum

    # Label pick: one compare + select + add per class; the iota along the
    # class axis is a per-class splat (no varying lane data).  The picked sum
    # is exact in the operand dtype (all other summands are exactly zero).
    class_ids = lax.broadcasted_iota(jnp.int32, x.shape, 1)
    picked = jnp.sum(jnp.where(class_ids == labels[:, None], shifted, 0.0),
                     axis=1).astype(jnp.float32)     # (BT, TS, 128)

    # TODO(synk): out-of-range labels (>= C, or negative != ignore_index)
    # silently give loss = logsumexp instead of torch's error.
    loss = jnp.log(sumexp) - picked                  # (BT, TS, 128) f32

    valid = labels != ignore_index
    if need_s_mask:                                  # ragged last spatial tile
        row_s = s0 * ts + lax.broadcasted_iota(jnp.int32, labels.shape, 1)
        valid = valid & (row_s < s_total)
    if need_b_mask:                                  # ragged last batch tile
        row_b = b0 * bt + lax.broadcasted_iota(jnp.int32, labels.shape, 0)
        valid = valid & (row_b < n)

    loss = jnp.where(valid, loss, 0.0)
    cnt = valid.astype(jnp.float32)

    loss_row = _fold_rows(jnp.sum(loss, axis=0))     # (1, 128)
    cnt_row = _fold_rows(jnp.sum(cnt, axis=0))       # (1, 128)

    loss_ref[...] = loss_row.reshape(loss_ref.shape)
    cnt_ref[...] = cnt_row.reshape(cnt_ref.shape)


def _pick_tiles(n, c, s_total, itemsize, target_bytes=4 * 1024 * 1024):
    """Pick (batch_tile, spatial_row_tile, grid_b, grid_s)."""
    # Minimum row tile keeping the block's (sublane, lane) dims legal and
    # sublane-packed for the native dtype (f32: 8 rows, bf16: 16 rows).  This
    # also guarantees >=2 KiB contiguous DMA per (batch, class) row.
    min_ts = 8 if itemsize >= 4 else 16
    row_bytes = c * 128 * itemsize                   # one spatial row, all classes
    if s_total <= min_ts:
        ts = s_total
    else:
        max_ts = max(min_ts, target_bytes // row_bytes)
        ts = min_ts
        while ts * 2 <= min(s_total, max_ts):
            ts *= 2
    num_s = pl.cdiv(s_total, ts)

    # Batch tiling amortizes the ~0.35us per-step overhead when the spatial
    # extent is small; never shrink the grid below 2 steps (v7x has 2 TCs).
    block_bytes = row_bytes * ts
    bt = 1
    while (bt * 2 <= n and block_bytes * bt * 2 <= target_bytes
           and pl.cdiv(n, bt * 2) * num_s >= 2):
        bt *= 2
    num_b = pl.cdiv(n, bt)

    # If everything collapsed into a single grid step, split spatially so both
    # v7x TensorCores get work.
    if num_b * num_s == 1 and ts >= 2 * min_ts:
        ts //= 2
        num_s = pl.cdiv(s_total, ts)
    return bt, ts, num_b, num_s


@functools.partial(jax.jit, static_argnames=("ignore_index",))
def ce_loss(preds, labels, *, ignore_index=-100):
    """torch.nn.CrossEntropyLoss (mean reduction) for NCHW logits, NHW labels."""
    if preds.ndim == 2:                              # plain (N, C) classification
        preds = preds.reshape(preds.shape[0], preds.shape[1], 1, 1)
        labels = labels.reshape(labels.shape[0], 1, 1)
    n, c, h, w = preds.shape
    hw = h * w

    # Free view of the contiguous NCHW buffer; pad spatial to a multiple of
    # 128 (padded labels = ignore_index, so they never count).
    hw_pad = ((hw + 127) // 128) * 128
    logits = preds.reshape(n, c, hw)
    labs = labels.reshape(n, hw).astype(jnp.int32)
    if hw_pad != hw:
        # TODO(synk): non-multiple-of-128 spatial extents cost one padding copy.
        logits = jnp.pad(logits, ((0, 0), (0, 0), (0, hw_pad - hw)))
        labs = jnp.pad(labs, ((0, 0), (0, hw_pad - hw)),
                       constant_values=ignore_index)
    s_total = hw_pad // 128
    logits = logits.reshape(n, c, s_total, 128)
    labs = labs.reshape(n, 1, s_total, 128)

    itemsize = jnp.dtype(preds.dtype).itemsize
    bt, ts, num_b, num_s = _pick_tiles(n, c, s_total, itemsize)
    # TODO(synk): very large C with a tiny spatial extent would need class-axis
    # tiling (online softmax across class blocks); not implemented here.

    bf16_compute = (preds.dtype == jnp.bfloat16) and _has_bf16_vpu()

    kernel = functools.partial(
        _ce_kernel, n=n, s_total=s_total, ignore_index=ignore_index,
        bf16_compute=bf16_compute,
        need_b_mask=(n % bt != 0), need_s_mask=(s_total % ts != 0))

    loss_p, cnt_p = pl.pallas_call(
        kernel,
        out_shape=(jax.ShapeDtypeStruct((num_b, num_s, 1, 128), jnp.float32),
                   jax.ShapeDtypeStruct((num_b, num_s, 1, 128), jnp.float32)),
        grid_spec=pltpu.PrefetchScalarGridSpec(
            num_scalar_prefetch=0,
            grid=(num_b, num_s),
            in_specs=[
                pl.BlockSpec((bt, c, ts, 128), lambda b, s: (b, 0, s, 0)),
                pl.BlockSpec((bt, 1, ts, 128), lambda b, s: (b, 0, s, 0)),
            ],
            out_specs=[
                pl.BlockSpec((1, 1, 1, 128), lambda b, s: (b, s, 0, 0)),
                pl.BlockSpec((1, 1, 1, 128), lambda b, s: (b, s, 0, 0)),
            ],
        ),
        compiler_params=pltpu.CompilerParams(
            dimension_semantics=("parallel", "parallel"),
            vmem_limit_bytes=48 * 1024 * 1024,
        ),
    )(logits, labs)

    total = jnp.sum(loss_p)
    count = jnp.sum(cnt_p)
    # torch returns the mean in the input dtype; all-ignored -> 0/0 = NaN
    # (matches torch's mean + ignore_index behavior).
    return (total / count).astype(preds.dtype)


def _reference_ce(preds_nchw, labels_nhw, ignore_index=-100):
    """Pure-JAX reference matching torch.nn.CrossEntropyLoss semantics."""
    n, c, h, w = preds_nchw.shape
    logits = jnp.transpose(preds_nchw, (0, 2, 3, 1)).reshape(-1, c)
    logits = logits.astype(jnp.float32)
    labels = labels_nhw.reshape(-1).astype(jnp.int32)
    valid = labels != ignore_index
    safe_labels = jnp.where(valid, labels, 0)
    logz = jax.nn.logsumexp(logits, axis=-1)
    picked = jnp.take_along_axis(logits, safe_labels[:, None], axis=-1)[:, 0]
    per_row = jnp.where(valid, logz - picked, 0.0)
    return jnp.sum(per_row) / jnp.sum(valid.astype(jnp.float32))


if __name__ == "__main__":
    key = jax.random.PRNGKey(0)
    k_preds, k_labels = jax.random.split(key)

    N, C, H, W = 2, 4, 16, 16
    preds = jax.random.normal(k_preds, (N, C, H, W), dtype=jnp.float32)
    labels = jax.random.randint(k_labels, (N, H, W), 0, C, dtype=jnp.int32)

    loss = ce_loss(preds, labels)
    jax.block_until_ready(loss)

    ref = _reference_ce(preds, labels)
    assert jnp.allclose(loss, ref, atol=1e-5, rtol=1e-5), (loss, ref)

    print("KERNEL_OK")
</pallas_src>

<mosaic_0001>
module attributes {stable_mosaic.version = 11 : i64} {
  func.func @_ce_kernel(%arg0: i32, %arg1: i32, %arg2: memref<1x4x2x128xf32, #tpu.memory_space<vmem>>, %arg3: memref<1x1x2x128xi32, #tpu.memory_space<vmem>>, %arg4: memref<1x1x1x128xf32, #tpu.memory_space<vmem>>, %arg5: memref<1x1x1x128xf32, #tpu.memory_space<vmem>>) attributes {dimension_semantics = [#tpu.dimension_semantics<parallel>, #tpu.dimension_semantics<parallel>], iteration_bounds = array<i64: 2, 1>, scalar_prefetch = 0 : i64, scratch_operands = 0 : i64, tpu.core_type = #tpu.core_type<tc>, window_params = [{transform_indices = @transform_0, window_bounds = array<i64: 1, 4, 2, 128>}, {transform_indices = @transform_1, window_bounds = array<i64: 1, 1, 2, 128>}, {transform_indices = @transform_2, window_bounds = array<i64: 1, 1, 1, 128>}, {transform_indices = @transform_3, window_bounds = array<i64: 1, 1, 1, 128>}]} {
    %c0 = arith.constant 0 : index
    %c0_0 = arith.constant 0 : index
    %c0_1 = arith.constant 0 : index
    %c0_2 = arith.constant 0 : index
    %0 = vector.load %arg2[%c0, %c0_0, %c0_1, %c0_2] : memref<1x4x2x128xf32, #tpu.memory_space<vmem>>, vector<1x4x2x128xf32>
    %c0_3 = arith.constant 0 : index
    %c0_4 = arith.constant 0 : index
    %c0_5 = arith.constant 0 : index
    %c0_6 = arith.constant 0 : index
    %1 = vector.load %arg3[%c0_3, %c0_4, %c0_5, %c0_6] : memref<1x1x2x128xi32, #tpu.memory_space<vmem>>, vector<1x1x2x128xi32>
    %2 = vector.shape_cast %1 : vector<1x1x2x128xi32> to vector<1x2x128xi32>
    %cst = arith.constant dense<0xFF800000> : vector<1x2x128xf32>
    %3 = vector.multi_reduction <maximumf>, %0, %cst [1] : vector<1x4x2x128xf32> to vector<1x2x128xf32>
    %4 = vector.shape_cast %3 : vector<1x2x128xf32> to vector<1x1x2x128xf32>
    %5 = vector.broadcast %4 : vector<1x1x2x128xf32> to vector<1x4x2x128xf32>
    %6 = arith.subf %0, %5 : vector<1x4x2x128xf32>
    %7 = math.exp %6 : vector<1x4x2x128xf32>
    %cst_7 = arith.constant dense<0.000000e+00> : vector<1x2x128xf32>
    %8 = vector.multi_reduction <add>, %7, %cst_7 [1] : vector<1x4x2x128xf32> to vector<1x2x128xf32>
    %9 = tpu.iota {dimensions = array<i32: 1>} : vector<1x4x2x128xi32>
    %10 = vector.shape_cast %2 : vector<1x2x128xi32> to vector<1x1x2x128xi32>
    %11 = vector.broadcast %10 : vector<1x1x2x128xi32> to vector<1x4x2x128xi32>
    %12 = arith.cmpi eq, %9, %11 : vector<1x4x2x128xi32>
    %cst_8 = arith.constant 0.000000e+00 : f32
    %13 = vector.broadcast %cst_8 : f32 to vector<1x4x2x128xf32>
    %14 = arith.select %12, %6, %13 : vector<1x4x2x128xi1>, vector<1x4x2x128xf32>
    %cst_9 = arith.constant dense<0.000000e+00> : vector<1x2x128xf32>
    %15 = vector.multi_reduction <add>, %14, %cst_9 [1] : vector<1x4x2x128xf32> to vector<1x2x128xf32>
    %16 = math.log %8 : vector<1x2x128xf32>
    %17 = arith.subf %16, %15 : vector<1x2x128xf32>
    %c-100_i32 = arith.constant -100 : i32
    %18 = vector.broadcast %c-100_i32 : i32 to vector<1x2x128xi32>
    %19 = arith.cmpi ne, %2, %18 : vector<1x2x128xi32>
    %cst_10 = arith.constant 0.000000e+00 : f32
    %20 = vector.broadcast %cst_10 : f32 to vector<1x2x128xf32>
    %21 = arith.select %19, %17, %20 : vector<1x2x128xi1>, vector<1x2x128xf32>
    %22 = arith.extui %19 : vector<1x2x128xi1> to vector<1x2x128xi32>
    %23 = arith.sitofp %22 : vector<1x2x128xi32> to vector<1x2x128xf32>
    %cst_11 = arith.constant dense<0.000000e+00> : vector<2x128xf32>
    %24 = vector.multi_reduction <add>, %21, %cst_11 [0] : vector<1x2x128xf32> to vector<2x128xf32>
    %cst_12 = arith.constant dense<0.000000e+00> : vector<128xf32>
    %25 = vector.multi_reduction <add>, %24, %cst_12 [0] : vector<2x128xf32> to vector<128xf32>
    %26 = vector.shape_cast %25 : vector<128xf32> to vector<1x128xf32>
    %cst_13 = arith.constant dense<0.000000e+00> : vector<2x128xf32>
    %27 = vector.multi_reduction <add>, %23, %cst_13 [0] : vector<1x2x128xf32> to vector<2x128xf32>
    %cst_14 = arith.constant dense<0.000000e+00> : vector<128xf32>
    %28 = vector.multi_reduction <add>, %27, %cst_14 [0] : vector<2x128xf32> to vector<128xf32>
    %29 = vector.shape_cast %28 : vector<128xf32> to vector<1x128xf32>
    %30 = vector.shape_cast %26 : vector<1x128xf32> to vector<1x1x1x128xf32>
    %c0_15 = arith.constant 0 : index
    %c0_16 = arith.constant 0 : index
    %c0_17 = arith.constant 0 : index
    %c0_18 = arith.constant 0 : index
    %31 = vector.load %arg4[%c0_15, %c0_16, %c0_17, %c0_18] : memref<1x1x1x128xf32, #tpu.memory_space<vmem>>, vector<1x1x1x128xf32>
    tpu.vector_store %arg4[%c0_15, %c0_16, %c0_17, %c0_18], %30 {strides = array<i32>} : memref<1x1x1x128xf32, #tpu.memory_space<vmem>>, vector<1x1x1x128xf32>,
    %32 = vector.shape_cast %29 : vector<1x128xf32> to vector<1x1x1x128xf32>
    %c0_19 = arith.constant 0 : index
    %c0_20 = arith.constant 0 : index
    %c0_21 = arith.constant 0 : index
    %c0_22 = arith.constant 0 : index
    %33 = vector.load %arg5[%c0_19, %c0_20, %c0_21, %c0_22] : memref<1x1x1x128xf32, #tpu.memory_space<vmem>>, vector<1x1x1x128xf32>
    tpu.vector_store %arg5[%c0_19, %c0_20, %c0_21, %c0_22], %32 {strides = array<i32>} : memref<1x1x1x128xf32, #tpu.memory_space<vmem>>, vector<1x1x1x128xf32>,
    return
  }
  func.func @transform_0(%arg0: i32, %arg1: i32) -> (i32, i32, i32, i32) {
    %c0_i32 = arith.constant 0 : i32
    %c0_i32_0 = arith.constant 0 : i32
    %c0_i32_1 = arith.constant 0 : i32
    return %arg0, %c0_i32, %arg1, %c0_i32_0 : i32, i32, i32, i32
  }
  func.func @transform_1(%arg0: i32, %arg1: i32) -> (i32, i32, i32, i32) {
    %c0_i32 = arith.constant 0 : i32
    %c0_i32_0 = arith.constant 0 : i32
    %c0_i32_1 = arith.constant 0 : i32
    return %arg0, %c0_i32, %arg1, %c0_i32_0 : i32, i32, i32, i32
  }
  func.func @transform_2(%arg0: i32, %arg1: i32) -> (i32, i32, i32, i32) {
    %c0_i32 = arith.constant 0 : i32
    %c0_i32_0 = arith.constant 0 : i32
    %c0_i32_1 = arith.constant 0 : i32
    return %arg0, %arg1, %c0_i32, %c0_i32_0 : i32, i32, i32, i32
  }
  func.func @transform_3(%arg0: i32, %arg1: i32) -> (i32, i32, i32, i32) {
    %c0_i32 = arith.constant 0 : i32
    %c0_i32_0 = arith.constant 0 : i32
    %c0_i32_1 = arith.constant 0 : i32
    return %arg0, %arg1, %c0_i32, %c0_i32_0 : i32, i32, i32, i32
  }
}

</mosaic_0001>

<bundles_post_ra>
// kernel: ce_loss.1
= control target key start
LH: loop header
LB: loop body
LE: loop exit
PB: predicated region body
PF: predicated region fallthrough
CT: control target
= control target key end

     0   :  { %s528_s12 = smov 0   ;;  %s530_s13 = smov 0   ;;  %s589_s0 = inlined_call_operand.vmem [shape: f32[2,4,2,128], index: 0, kind: input, shape index: {}]   ;;  %s590_s1 = inlined_call_operand.vmem [shape: s32[2,1,2,128], index: 1, kind: input, shape index: {}]   ;;  %s591_s2 = inlined_call_operand.vmem [shape: f32[2,1,1,128], index: 2, kind: output, shape index: {0}]   ;;  %s592_s3 = inlined_call_operand.vmem [shape: f32[2,1,1,128], index: 3, kind: output, shape index: {1}]  }
   0x1   :  { %s532_s14 = smov 0  }
   0x2 LB: > { %s26_s15 = sadd.s32 1, %s501_s13  ;;  %p440_p0 = scmp.ge.s32.totalorder %s505_s14, 1  ;;  %s505_s14 = sphi %s532_s14, %s14_s14   ;;  %s501_s13 = sphi %s530_s13, %s594_s13   ;;  %s497_s12 = sphi %s528_s12, %s593_s12  }
   0x3   : > { %p28_p1 = scmp.ge.s32.totalorder %s26_s15, 2  ;;  %p175_p2 = scmp.lt.s32.totalorder %s505_s14, 3 }
   0x5   : > { %s596_s15 = smov (%p28_p1, %s26_s15), 0  ;;  %p176_p3 = pnand %p440_p0, %p175_p2 }
   0x6   : > { %p216_p4 = scmp.lt.s32.totalorder (!%p176_p3), %s497_s12, 1  ;;  %vm248_vm0 = vcmask (!%p176_p3), 1041408   ;;  %v507_v12 = vmov (!%p176_p3), 0.0  }
   0x7   : > { %179 = sbr.rel (%p176_p3) target bundleno = 77 (0x4d), region = 28 }
   0xe   : > { %s598_s12 = smov (!%p216_p4, %s497_s12), 1 }
   0xf   : > { %s447_s16 = sshll.u32 %s598_s12, 3  ;;  %s443_s17 = sshll.u32 %s598_s12, 1 }
  0x10   : > { %s223_s20 = scalar_lea.vmem %s589_s0, %s447_s16  ;;  %s230_s23 = scalar_lea.vmem %s590_s1, %s443_s17 }
  0x11   : > { %v243_v0 = vld [vmem:[%s223_s20] sm:$0x3]  ;;  %v244_v1 = vld [vmem:[%s223_s20 + $0x2] sm:$0x3]  ;;  %v245_v2 = vld [vmem:[%s223_s20 + $0x4] sm:$0x3]  ;;  %s242_s26 = scalar_lea.vmem %s592_s3, %s598_s12  ;;  %s236_s29 = scalar_lea.vmem %s591_s2, %s598_s12 }
  0x12   : > { %v246_v3 = vld [vmem:[%s223_s20 + $0x6] sm:$0x3]  ;;  %v249_v4 = vsel %vm248_vm0, %v243_v0, -inf  ;;  %v250_v5 = vsel %vm248_vm0, %v244_v1, -inf  ;;  %v251_v6 = vsel %vm248_vm0, %v245_v2, -inf }
  0x13   : > { %v252_v7 = vsel %vm248_vm0, %v246_v3, -inf  ;;  %v253_v8 = vmax.f32 %v249_v4, %v250_v5  ;;  %v247_v9 = vld [vmem:[%s230_s23] sm:$0x3] }
  0x14   : > { %v254_v10 = vmax.f32 %v251_v6, %v252_v7  ;;  %vm293_vm1 = vcmp.ne.s32.totalorder %v247_v9, 4294967196  ;;  %vm275_vm2 = vcmp.eq.s32.totalorder %v247_v9, 0  ;;  %vm276_vm3 = vcmp.eq.s32.totalorder %v247_v9, 1 }
  0x15   : > { %v444_v13 = vsel %vm293_vm1, 1.0, %v507_v12  ;;  %vm277_vm4 = vcmp.eq.s32.totalorder %v247_v9, 2  ;;  %vm278_vm5 = vcmp.eq.s32.totalorder %v247_v9, 3 }
  0x16   : > { %v255_v11 = vmax.f32 %v253_v8, %v254_v10  ;;  %v306_v14 = vsel %vm248_vm0, %v444_v13, 0.0 }
  0x17   : > { %v307_v19 = vrot.slane %v306_v14, 4 }
  0x18   : > { %v256_v15 = vsub.f32 %v243_v0, %v255_v11  ;;  %v257_v16 = vsub.f32 %v244_v1, %v255_v11  ;;  %v258_v17 = vsub.f32 %v245_v2, %v255_v11  ;;  %v259_v18 = vsub.f32 %v246_v3, %v255_v11 }
  0x19   : > { %v308_v24 = vadd.f32 %v307_v19, %v306_v14 }
  0x1a   : > { %v260_v20 = vmul.f32 1.442695, %v256_v15  ;;  %v262_v21 = vmul.f32 1.442695, %v257_v16  ;;  %v264_v22 = vmul.f32 1.442695, %v258_v17 }
  0x1b   : > { %v266_v23 = vmul.f32 1.442695, %v259_v18  ;;  %v309_v25 = vrot.slane %v308_v24, 2  ;;  %v279_v38 = vsel %vm275_vm2, %v256_v15, 0.0  ;;  %v280_v39 = vsel %vm276_vm3, %v257_v16, 0.0 }
  0x1c   : > { %473 = vpow2.f32 %v260_v20  ;;  %v283_v42 = vsel %vm248_vm0, %v279_v38, 0.0  ;;  %v284_v43 = vsel %vm248_vm0, %v280_v39, 0.0  ;;  %v281_v44 = vsel %vm277_vm4, %v258_v17, 0.0 }
  0x1d   : > { %475 = vpow2.f32 %v262_v21  ;;  %v310_v26 = vadd.f32 %v309_v25, %v308_v24  ;;  %v285_v45 = vadd.f32 %v284_v43, %v283_v42  ;;  %v286_v46 = vsel %vm248_vm0, %v281_v44, 0.0 }
  0x1e   : > { %477 = vpow2.f32 %v264_v22  ;;  %v282_v47 = vsel %vm278_vm5, %v259_v18, 0.0 }
  0x1f   : > { %479 = vpow2.f32 %v266_v23  ;;  %v311_v27 = vrot.slane %v310_v26, 1  ;;  %v287_v48 = vadd.f32 %v286_v46, %v285_v45  ;;  %v288_v49 = vsel %vm248_vm0, %v282_v47, 0.0 }
  0x21   : > { %v312_v29 = vadd.f32 %v311_v27, %v310_v26  ;;  %v289_v50 = vadd.f32 %v288_v49, %v287_v48 }
  0x23   : > { %314 = vst [vmem:[%s242_s26] sm:$0x1] %v312_v29 }
  0x26   : > { %v474_v28 = vpop.eup %473 }
  0x27   : > { %v476_v30 = vpop.eup %475  ;;  %v268_v31 = vsel %vm248_vm0, %v474_v28, 0.0 }
  0x28   : > { %v478_v32 = vpop.eup %477  ;;  %v269_v33 = vsel %vm248_vm0, %v476_v30, 0.0 }
  0x29   : > { %v480_v34 = vpop.eup %479  ;;  %v270_v35 = vadd.f32 %v269_v33, %v268_v31  ;;  %v271_v36 = vsel %vm248_vm0, %v478_v32, 0.0 }
  0x2a   : > { %v273_v37 = vsel %vm248_vm0, %v480_v34, 0.0 }
  0x2b   : > { %v272_v40 = vadd.f32 %v271_v36, %v270_v35 }
  0x2d   : > { %v274_v41 = vadd.f32 %v273_v37, %v272_v40 }
  0x2f   : > { %481 = vlog2.f32 %v274_v41 }
  0x39   : > { %v482_v51 = vpop.eup %481 }
  0x3a   : > { %v291_v52 = vmul.f32 0.6931472, %v482_v51 }
  0x3c   : > { %v292_v53 = vsub.f32 %v291_v52, %v289_v50 }
  0x3e   : > { %v294_v54 = vsel %vm293_vm1, %v292_v53, 0.0 }
  0x3f   : > { %v298_v55 = vsel %vm248_vm0, %v294_v54, 0.0 }
  0x40   : > { %v299_v56 = vrot.slane %v298_v55, 4 }
  0x42   : > { %v300_v57 = vadd.f32 %v299_v56, %v298_v55 }
  0x44   : > { %v301_v58 = vrot.slane %v300_v57, 2 }
  0x46   : > { %v302_v59 = vadd.f32 %v301_v58, %v300_v57 }
  0x48   : > { %v303_v60 = vrot.slane %v302_v59, 1 }
  0x4a   : > { %v304_v61 = vadd.f32 %v303_v60, %v302_v59 }
  0x4c   : > { %313 = vst [vmem:[%s236_s29] sm:$0x1] %v304_v61 }
  0x4d PF: > { %s14_s14 = sadd.s32 1, %s505_s14   ;;  %s593_s12 = smov %s501_s13 }
  0x4e   : > { %p11_p5 = scmp.ge.s32.totalorder %s14_s14, 4   ;;  %s594_s13 = smov %s596_s15 }
  0x50   :  { %13 = sbr.rel (!%p11_p5) target bundleno = 2 (0x2), region = 73 }

</bundles_post_ra>
